<compile_context>
chip_gen: v6e
topology: v6e:2x2x1
jax: 0.10.0
libtpu: 0.0.40
codegen_flags: <defaults>
</compile_context>

<pallas_src>
import jax
import jax.numpy as jnp
from jax import lax
from jax.experimental import pallas as pl
from jax.experimental.pallas import tpu as pltpu


def _ffn_kernel(x_ref, w1_ref, w3_ref, w2_ref, o_ref, acc_ref):
    # grid = (token tiles [parallel], intermediate-dim tiles [arbitrary/reduction])
    j = pl.program_id(1)

    @pl.when(j == 0)
    def _():
        acc_ref[...] = jnp.zeros_like(acc_ref)

    xb = x_ref[...]          # (tt, D)  bf16, resident across the j sweep
    w1 = w1_ref[...]         # (tf, D)  bf16, native [inter, dim] tile
    w3 = w3_ref[...]         # (tf, D)  bf16
    w2 = w2_ref[...]         # (D, tf)  bf16, native [dim, inter] tile

    # Contract last dims of both operands (== x @ w.T, no transpose emitted).
    contract_last = (((1,), (1,)), ((), ()))
    h1 = lax.dot_general(xb, w1, contract_last,
                         preferred_element_type=jnp.float32)   # (tt, tf) f32
    h3 = lax.dot_general(xb, w3, contract_last,
                         preferred_element_type=jnp.float32)   # (tt, tf) f32

    # SiLU(h1) * h3 in f32; exp + exact reciprocal both run on the EUP slot.
    g = h1 * pl.reciprocal(1.0 + jnp.exp(-h1), approx=False) * h3

    # Partial contribution of this intermediate-dim tile to the output.
    acc_ref[...] += lax.dot_general(g.astype(jnp.bfloat16), w2, contract_last,
                                    preferred_element_type=jnp.float32)  # (tt, D)

    @pl.when(j == pl.num_programs(1) - 1)
    def _():
        o_ref[...] = acc_ref[...].astype(o_ref.dtype)


def _round_up(n, k):
    return (n + k - 1) // k * k


def _largest_divisor_tile(total, target, granule):
    """Largest multiple of `granule` <= min(target, total) dividing `total`, else None."""
    best = None
    t = granule
    hi = min(target, total)
    while t <= hi:
        if total % t == 0:
            best = t
        t += granule
    return best


def feed_forward(x, w1, w3, w2, *, tile_t=512, tile_f=1024, out_dtype=jnp.bfloat16):
    """x: [..., dim]; w1, w3: [inter, dim]; w2: [dim, inter] (native nn.Linear layout).

    Returns the SwiGLU FFN output in `out_dtype` (bf16 by default — the model's
    activation dtype). Tiles are auto-shrunk to fit this generation's VMEM.
    """
    orig_shape = x.shape
    dim = orig_shape[-1]
    inter = w1.shape[0]
    assert w1.shape == (inter, dim) and w3.shape == (inter, dim)
    assert w2.shape == (dim, inter)

    # bf16 activations and weights (no-op casts if already bf16).
    # TODO(synk): in a real deployment cast the weights to bf16 once at load time.
    act_dtype = jnp.bfloat16
    xt = x.reshape(-1, dim).astype(act_dtype)
    w1 = w1.astype(act_dtype)
    w3 = w3.astype(act_dtype)
    w2 = w2.astype(act_dtype)
    T = xt.shape[0]

    # ---- intermediate-dim tiling: multiple of 128, dividing (possibly padded) inter.
    tf = _largest_divisor_tile(inter, tile_f, 128)
    inter_pad = inter
    if tf is None:
        # Ragged intermediate size: zero-pad to a multiple of 128 (exact: the
        # padded hidden units contribute silu(0)*0 = 0 to the output).
        # TODO(synk): pre-pad these weights once at model load, not per call.
        inter_pad = _round_up(inter, 128)
        tf = _largest_divisor_tile(inter_pad, tile_f, 128)
        w1 = jnp.pad(w1, ((0, inter_pad - inter), (0, 0)))
        w3 = jnp.pad(w3, ((0, inter_pad - inter), (0, 0)))
        w2 = jnp.pad(w2, ((0, 0), (0, inter_pad - inter)))

    # ---- token tiling: prefer a tile that divides T (avoid activation padding).
    T8 = _round_up(max(T, 8), 8)
    tt = _largest_divisor_tile(T8, tile_t, 8) or 8
    if tt * 4 < min(tile_t, T8):
        # Best divisor is tiny (e.g. prime-ish T): accept a small pad instead.
        tt = min(_round_up(tile_t, 8), T8)
    # Megacore / multi-TC (v7x): keep >= 2 token tiles whenever there is work for two.
    if T8 > 8 and pl.cdiv(T8, tt) < 2:
        tt = _round_up(pl.cdiv(T8, 2), 8)

    # ---- VMEM budget respecting this generation's physical capacity.
    try:
        vmem_cap = pltpu.get_tpu_info().vmem_capacity_bytes
    except Exception:
        vmem_cap = 64 << 20            # conservative: v7x per-TensorCore VMEM
    budget = int(vmem_cap * 0.85)

    def vmem_est(tt_, tf_):
        return (2 * tt_ * dim * 2      # x + out tiles (bf16, single-buffered)
                + 12 * tf_ * dim       # w1 + w3 + w2 tiles (bf16, double-buffered)
                + tt_ * dim * 4)       # f32 accumulator scratch

    while vmem_est(tt, tf) > budget:
        if tf > 128:
            tf = _largest_divisor_tile(inter_pad, tf - 128, 128) or 128
        elif tt > 8:
            tt = max(8, _round_up(tt // 2, 8))
        else:
            break

    T_pad = _round_up(T8, tt)
    if T_pad != T:
        xt = jnp.pad(xt, ((0, T_pad - T), (0, 0)))

    grid = (T_pad // tt, inter_pad // tf)
    vmem_limit = min(max(int(vmem_est(tt, tf) * 1.25) + (2 << 20), 16 << 20), budget)

    out = pl.pallas_call(
        _ffn_kernel,
        out_shape=jax.ShapeDtypeStruct((T_pad, dim), out_dtype),
        grid_spec=pltpu.PrefetchScalarGridSpec(
            num_scalar_prefetch=0,
            grid=grid,
            in_specs=[
                # x tile is resident across the whole j sweep -> single buffer.
                pl.BlockSpec((tt, dim), lambda i, j: (i, 0),
                             pipeline_mode=pl.Buffered(1)),
                pl.BlockSpec((tf, dim), lambda i, j: (j, 0)),   # w1 (native layout)
                pl.BlockSpec((tf, dim), lambda i, j: (j, 0)),   # w3
                pl.BlockSpec((dim, tf), lambda i, j: (0, j)),   # w2 (native layout)
            ],
            # out tile only written at the last j step -> single buffer.
            out_specs=pl.BlockSpec((tt, dim), lambda i, j: (i, 0),
                                   pipeline_mode=pl.Buffered(1)),
            scratch_shapes=[pltpu.VMEM((tt, dim), jnp.float32)],
        ),
        compiler_params=pltpu.CompilerParams(
            dimension_semantics=("parallel", "arbitrary"),
            vmem_limit_bytes=vmem_limit),
    )(xt, w1, w3, w2)

    if T_pad != T:
        out = out[:T]
    return out.reshape(orig_shape)


if __name__ == "__main__":
    # Small synthetic config consistent with ModelArgs (dim, intermediate_size).
    batch, seq, dim, inter = 2, 64, 256, 1024

    key = jax.random.PRNGKey(0)
    kx, k1, k2, k3 = jax.random.split(key, 4)
    # Activations and weights in bf16 (deployment dtype); cast once, outside the kernel.
    x = jax.random.normal(kx, (batch, seq, dim), dtype=jnp.float32).astype(jnp.bfloat16)
    w1 = (jax.random.normal(k1, (inter, dim), dtype=jnp.float32) * 0.02).astype(jnp.bfloat16)
    w3 = (jax.random.normal(k3, (inter, dim), dtype=jnp.float32) * 0.02).astype(jnp.bfloat16)
    w2 = (jax.random.normal(k2, (dim, inter), dtype=jnp.float32) * 0.02).astype(jnp.bfloat16)

    # tile_f=256 just to exercise both grid axes at this tiny shape
    # (token axis auto-derives to two tiles for the megacore check).
    y = feed_forward(x, w1, w3, w2, tile_f=256)
    jax.block_until_ready(y)

    # Pure-JAX reference (f32 math on the bf16-stored values).
    xf = x.astype(jnp.float32)
    w1f, w3f, w2f = (w.astype(jnp.float32) for w in (w1, w3, w2))
    h1 = xf @ w1f.T
    h3 = xf @ w3f.T
    y_ref = (jax.nn.silu(h1) * h3) @ w2f.T

    assert y.shape == x.shape
    err = float(jnp.max(jnp.abs(y.astype(jnp.float32) - y_ref)))
    scale = float(jnp.max(jnp.abs(y_ref)))
    # bf16 operands/output => looser tolerance than pure f32.
    assert err <= 2e-2 * scale + 1e-3, (err, scale)

    print("KERNEL_OK")
</pallas_src>

<mosaic_0001>
module attributes {stable_mosaic.version = 11 : i64} {
  func.func @_ffn_kernel(%arg0: i32, %arg1: i32, %arg2: memref<64x256xbf16, #tpu.memory_space<vmem>>, %arg3: memref<256x256xbf16, #tpu.memory_space<vmem>>, %arg4: memref<256x256xbf16, #tpu.memory_space<vmem>>, %arg5: memref<256x256xbf16, #tpu.memory_space<vmem>>, %arg6: memref<64x256xbf16, #tpu.memory_space<vmem>>, %arg7: memref<64x256xf32, #tpu.memory_space<vmem>>) attributes {dimension_semantics = [#tpu.dimension_semantics<parallel>, #tpu.dimension_semantics<arbitrary>], iteration_bounds = array<i64: 2, 4>, scalar_prefetch = 0 : i64, scratch_operands = 1 : i64, tpu.core_type = #tpu.core_type<tc>, window_params = [{pipeline_mode = #tpu.pipeline_mode<synchronous>, transform_indices = @transform_0, window_bounds = array<i64: 64, 256>}, {transform_indices = @transform_1, window_bounds = array<i64: 256, 256>}, {transform_indices = @transform_2, window_bounds = array<i64: 256, 256>}, {transform_indices = @transform_3, window_bounds = array<i64: 256, 256>}, {pipeline_mode = #tpu.pipeline_mode<synchronous>, transform_indices = @transform_4, window_bounds = array<i64: 64, 256>}]} {
    %c0_i32 = arith.constant 0 : i32
    %0 = arith.cmpi eq, %arg1, %c0_i32 : i32
    %1 = arith.extui %0 : i1 to i32
    %c0_i32_0 = arith.constant 0 : i32
    %2 = arith.cmpi ne, %1, %c0_i32_0 : i32
    scf.if %2 {
      %cst_17 = arith.constant 0.000000e+00 : f32
      %25 = vector.broadcast %cst_17 : f32 to vector<64x256xf32>
      %c0_18 = arith.constant 0 : index
      %c0_19 = arith.constant 0 : index
      %26 = vector.load %arg7[%c0_18, %c0_19] : memref<64x256xf32, #tpu.memory_space<vmem>>, vector<64x256xf32>
      tpu.vector_store %arg7[%c0_18, %c0_19], %25 {strides = array<i32>} : memref<64x256xf32, #tpu.memory_space<vmem>>, vector<64x256xf32>,
    } else {
    }
    %c0 = arith.constant 0 : index
    %c0_1 = arith.constant 0 : index
    %3 = vector.load %arg2[%c0, %c0_1] : memref<64x256xbf16, #tpu.memory_space<vmem>>, vector<64x256xbf16>
    %c0_2 = arith.constant 0 : index
    %c0_3 = arith.constant 0 : index
    %4 = vector.load %arg3[%c0_2, %c0_3] : memref<256x256xbf16, #tpu.memory_space<vmem>>, vector<256x256xbf16>
    %c0_4 = arith.constant 0 : index
    %c0_5 = arith.constant 0 : index
    %5 = vector.load %arg4[%c0_4, %c0_5] : memref<256x256xbf16, #tpu.memory_space<vmem>>, vector<256x256xbf16>
    %c0_6 = arith.constant 0 : index
    %c0_7 = arith.constant 0 : index
    %6 = vector.load %arg5[%c0_6, %c0_7] : memref<256x256xbf16, #tpu.memory_space<vmem>>, vector<256x256xbf16>
    %cst = arith.constant dense<0.000000e+00> : vector<64x256xf32>
    %7 = tpu.matmul %3, %4, %cst {dimension_numbers = #tpu.dot_dimension_numbers<[1], [1], [0], [0], [0, 0, 1, 0], [], []>} : vector<64x256xbf16>, vector<256x256xbf16>, vector<64x256xf32> -> vector<64x256xf32>
    %cst_8 = arith.constant dense<0.000000e+00> : vector<64x256xf32>
    %8 = tpu.matmul %3, %5, %cst_8 {dimension_numbers = #tpu.dot_dimension_numbers<[1], [1], [0], [0], [0, 0, 1, 0], [], []>} : vector<64x256xbf16>, vector<256x256xbf16>, vector<64x256xf32> -> vector<64x256xf32>
    %cst_9 = arith.constant 0.000000e+00 : f32
    %9 = vector.broadcast %cst_9 : f32 to vector<64x256xf32>
    %10 = arith.subf %9, %7 : vector<64x256xf32>
    %11 = math.exp %10 : vector<64x256xf32>
    %cst_10 = arith.constant 1.000000e+00 : f32
    %12 = vector.broadcast %cst_10 : f32 to vector<64x256xf32>
    %13 = arith.addf %12, %11 : vector<64x256xf32>
    %14 = tpu.reciprocal %13 : vector<64x256xf32> -> vector<64x256xf32>
    %15 = arith.mulf %7, %14 : vector<64x256xf32>
    %16 = arith.mulf %15, %8 : vector<64x256xf32>
    %c0_11 = arith.constant 0 : index
    %c0_12 = arith.constant 0 : index
    %17 = vector.load %arg7[%c0_11, %c0_12] : memref<64x256xf32, #tpu.memory_space<vmem>>, vector<64x256xf32>
    %18 = arith.truncf %16 : vector<64x256xf32> to vector<64x256xbf16>
    %cst_13 = arith.constant dense<0.000000e+00> : vector<64x256xf32>
    %19 = tpu.matmul %18, %6, %cst_13 {dimension_numbers = #tpu.dot_dimension_numbers<[1], [1], [0], [0], [0, 0, 1, 0], [], []>} : vector<64x256xbf16>, vector<256x256xbf16>, vector<64x256xf32> -> vector<64x256xf32>
    %20 = arith.addf %17, %19 : vector<64x256xf32>
    %c0_14 = arith.constant 0 : index
    %c0_15 = arith.constant 0 : index
    %21 = vector.load %arg7[%c0_14, %c0_15] : memref<64x256xf32, #tpu.memory_space<vmem>>, vector<64x256xf32>
    tpu.vector_store %arg7[%c0_14, %c0_15], %20 {strides = array<i32>} : memref<64x256xf32, #tpu.memory_space<vmem>>, vector<64x256xf32>,
    %c3_i32 = arith.constant 3 : i32
    %22 = arith.cmpi eq, %arg1, %c3_i32 : i32
    %23 = arith.extui %22 : i1 to i32
    %c0_i32_16 = arith.constant 0 : i32
    %24 = arith.cmpi ne, %23, %c0_i32_16 : i32
    scf.if %24 {
      %c0_17 = arith.constant 0 : index
      %c0_18 = arith.constant 0 : index
      %25 = vector.load %arg7[%c0_17, %c0_18] : memref<64x256xf32, #tpu.memory_space<vmem>>, vector<64x256xf32>
      %26 = arith.truncf %25 : vector<64x256xf32> to vector<64x256xbf16>
      %c0_19 = arith.constant 0 : index
      %c0_20 = arith.constant 0 : index
      %27 = vector.load %arg6[%c0_19, %c0_20] : memref<64x256xbf16, #tpu.memory_space<vmem>>, vector<64x256xbf16>
      tpu.vector_store %arg6[%c0_19, %c0_20], %26 {strides = array<i32>} : memref<64x256xbf16, #tpu.memory_space<vmem>>, vector<64x256xbf16>,
    } else {
    }
    return
  }
  func.func @transform_0(%arg0: i32, %arg1: i32) -> (i32, i32) {
    %c0_i32 = arith.constant 0 : i32
    %c0_i32_0 = arith.constant 0 : i32
    return %arg0, %c0_i32 : i32, i32
  }
  func.func @transform_1(%arg0: i32, %arg1: i32) -> (i32, i32) {
    %c0_i32 = arith.constant 0 : i32
    %c0_i32_0 = arith.constant 0 : i32
    return %arg1, %c0_i32 : i32, i32
  }
  func.func @transform_2(%arg0: i32, %arg1: i32) -> (i32, i32) {
    %c0_i32 = arith.constant 0 : i32
    %c0_i32_0 = arith.constant 0 : i32
    return %arg1, %c0_i32 : i32, i32
  }
  func.func @transform_3(%arg0: i32, %arg1: i32) -> (i32, i32) {
    %c0_i32 = arith.constant 0 : i32
    %c0_i32_0 = arith.constant 0 : i32
    return %c0_i32, %arg1 : i32, i32
  }
  func.func @transform_4(%arg0: i32, %arg1: i32) -> (i32, i32) {
    %c0_i32 = arith.constant 0 : i32
    %c0_i32_0 = arith.constant 0 : i32
    return %arg0, %c0_i32 : i32, i32
  }
}

</mosaic_0001>

<bundles_post_ra>
// kernel: tpu_custom_call.1
= control target key start
LH: loop header
LB: loop body
LE: loop exit
PB: predicated region body
PF: predicated region fallthrough
CT: control target
= control target key end

     0   :  { %s2851_s0 = inlined_call_operand.hbm [shape: bf16[128,256], index: 0, kind: input, shape index: {}]   ;;  %s2852_s1 = inlined_call_operand.hbm [shape: bf16[1024,256], index: 1, kind: input, shape index: {}]   ;;  %s2853_s2 = inlined_call_operand.hbm [shape: bf16[1024,256], index: 2, kind: input, shape index: {}]   ;;  %s2854_s3 = inlined_call_operand.hbm [shape: bf16[256,1024], index: 3, kind: input, shape index: {}]   ;;  %s2855_s4 = inlined_call_operand.hbm [shape: bf16[128,256], index: 4, kind: output, shape index: {}]  }
   0x1   :  { %2874 = sst [smem:[#allocation22_spill]] %s2851_s0 }
   0x2   :  { %2875 = sst [smem:[#allocation23_spill]] %s2852_s1 }
   0x3   :  { %2876 = sst [smem:[#allocation24_spill]] %s2853_s2 }
   0x4   :  { %9 = vsyncpa [#allocation4], 0 }
   0x5   :  { %10 = vsyncpa [#allocation7], 0 }
   0x6   :  { %12 = vsyncpa [#allocation7 + $0x1], 0 }
   0x7   :  { %13 = vsyncpa [#allocation10], 0 }
   0x8   :  { %15 = vsyncpa [#allocation10 + $0x1], 0 }
   0x9   :  { %16 = vsyncpa [#allocation5], 0  ;;  %s2378_s15 = smov 0   ;;  %s2380_s16 = smov 0  }
   0xa   :  { %s2382_s17 = smov 0   ;;  %s2384_s18 = smov 0  }
   0xb   :  { %s2386_s19 = smov 0   ;;  %s2388_s20 = smov 0  }
   0xc   :  { %s2390_s21 = smov 0   ;;  %s2392_s22 = smov 0  }
   0xd   :  { %s2394_s23 = smov 0   ;;  %s2396_s24 = smov 0  }
   0xe   :  { %s2398_s25 = smov 0  }
   0xf LB: > { %2877 = sst [smem:[#allocation16_spill]] %s2320_s20  ;;  %s31_s26 = sadd.s32 1, %s2332_s23  ;;  %s2340_s25 = sphi %s2398_s25, %s22_s25   ;;  %s2336_s24 = sphi %s2396_s24, %s2909_s24   ;;  %s2332_s23 = sphi %s2394_s23, %s2916_s23   ;;  %s2328_s22 = sphi %s2392_s22, %s2907_s22   ;;  %s2324_s21 = sphi %s2390_s21, %s2915_s21   ;;  %s2320_s20 = sphi %s2388_s20, %s2906_s20   ;;  %s2316_s19 = sphi %s2386_s19, %s2914_s19   ;;  %s2312_s18 = sphi %s2384_s18, %s2913_s18   ;;  %s2308_s17 = sphi %s2382_s17, %s2912_s17   ;;  %s2304_s16 = sphi %s2380_s16, %s2911_s16   ;;  %s2300_s15 = sphi %s2378_s15, %s2910_s15  }
  0x10   : > { %2878 = sst [smem:[#allocation17_spill]] %s2336_s24  ;;  %s34_s27 = sadd.s32 1, %s2336_s24 }
  0x11   : > { %p32_p0 = scmp.ge.s32.totalorder %s31_s26, 4  ;;  %s67_s28 = sadd.s32 1, %s2308_s17 }
  0x12   : > { %p74_p1 = scmp.ne.s32.totalorder %s2308_s17, %s2304_s16  ;;  %p75_p2 = scmp.eq.s32.totalorder %s2340_s25, 0 }
  0x13   : > { %s2918_s26 = smov (%p32_p0, %s31_s26), 0  ;;  %s2920_s27 = smov (!%p32_p0, %s34_s27), %s2336_s24 }
  0x14   : > { %2879 = sst [smem:[#allocation18_spill]] %s2918_s26  ;;  %s64_s29 = ssub.s32 %s2332_s23, %s2918_s26 }
  0x15   : > { %p2444_p3 = por %p75_p2, %p74_p1  ;;  %p36_p4 = scmp.ge.s32.totalorder %s2920_s27, 2 }
  0x16   : > { %p65_p5 = scmp.eq.s32.totalorder %s64_s29, 0  ;;  %p1783_p6 = scmp.lt.s32.totalorder %s2340_s25, 8 }
  0x17   : > { %s2922_s27 = smov (%p36_p4, %s2920_s27), 0  ;;  %s199_s7 = sand.u32 1, %s2340_s25  }
  0x18   : > { %2881 = sst [smem:[#allocation19_spill]] %s2922_s27  ;;  %s2857_s8 = sand.u32 1, %s2308_s17  }
  0x19   : > { %s2451_s5 = scalar_select %p65_p5, %s2308_s17, %s67_s28  }
  0x1a   : > { %s2460_s9 = sshll.u32 %s2857_s8, 8  ;;  %s1713_s10 = sshll.u32 %s2332_s23, 12 }
  0x1b   : > { %2882 = sst [smem:[#allocation20_spill]] %s2451_s5  ;;  %s203_s14 = scalar_lea.vmem [#allocation6], %s2460_s9 }
  0x1c   : > { %s2883_s1 = sld [smem:[#allocation23_spill]]  ;;  %s211_s29 = sshll.u32 %s203_s14, 4  ;;  %s212_s29 = int_to_ptr.vmem [resolvable:$true] %s211_s29 }
  0x1d   : > { %p2469_p7 = pnand %p1783_p6, %p2444_p3  ;;  %s2885_s2 = sld [smem:[#allocation24_spill]] }
  0x1e   : > { %s2478_s5 = scalar_lea.sflag [#allocation7], %s199_s7  ;;  %s2113_s11 = scalar_lea.vmem %s212_s29, 4096 }
  0x1f   : > { %s2884_s26 = scalar_select %p2469_p7, 1, 0 }
  0x20   : > { %p2867_p8 = pneg %p2469_p7  ;;  %p2114_p9 = scmp.ne.s32.totalorder %s212_s29, %s2113_s11 }
  0x21   : > { %s2342_s30 = smov [#allocation6]  }
  0x22   : > { %s210_s13 = scalar_lea.hbm %s2883_s1, %s1713_s10  ;;  %p2116_p10 = pnand %p2114_p9, %p2867_p8 }
  0x23   : > { %s2476_s8 = scalar_lea.hbm %s2885_s2, %s1713_s10  ;;  %s2118_s12 = sshll.u32 %s2342_s30, 4  ;;  %s2119_s12 = int_to_ptr.vmem [resolvable:$false] %s2118_s12 }
  0x24   : > { %p2117_p11 = pneg %p2116_p10  ;;  %s2120_s14 = scalar_lea.vmem %s2119_s12, 8192 }
  0x25   : > { %p2121_p12 = scmp.lt.s32.totalorder %s212_s29, %s2119_s12  ;;  %p2122_p13 = scmp.lt.s32.totalorder %s2120_s14, %s2113_s11 }
  0x27   : > { %p2123_p0 = por %p2122_p13, %p2121_p12 }
  0x29   : > { %p2124_p1 = pnand %p2123_p0, %p2117_p11 }
  0x2b   : > { %2127 = shalt.err (!%p2124_p1)
}
  0x2c   : > { %s2858_s6 = smov 128   ;;  %s2860_s7 = smov 8  }
  0x2d   : > { %1776 = dma.hbm_to_vmem [thread:$0]  (!%p2469_p7), %s210_s13, 4096, %s212_s29, %s2478_s5, %s2858_s6, %s2858_s6, %s2860_s7  }
  0x2e   : > { %s2492_s10 = sadd.s32 4294967295, %s2340_s25   ;;  %s2886_s28 = ssub.s32 %s2336_s24, %s2922_s27 }
  0x2f   : > { %p39_p2 = scmp.eq.s32.totalorder %s2886_s28, 0  ;;  %s41_s11 = sadd.s32 1, %s2320_s20 }
  0x30   : > { %p54_p3 = scmp.ne.s32.totalorder %s2316_s19, %s2312_s18  ;;  %p55_p4 = scmp.eq.s32.totalorder %s2492_s10, 0 }
  0x31   : > { %s2502_s30 = scalar_select %p39_p2, %s2320_s20, %s41_s11  }
  0x32   : > { %p2504_p5 = por %p55_p4, %p54_p3  ;;  %p80_p6 = scmp.ne.s32.totalorder %s2304_s16, %s2300_s15 }
  0x33   : > { %2887 = sst [smem:[#allocation21_spill]] %s2502_s30  ;;  %p155_p9 = scmp.ne.s32.totalorder %s2320_s20, %s2316_s19 }
  0x34   : > { %s2888_s12 = scalar_select %p2504_p5, 1, 0 }
  0x35   : > { %p156_p10 = scmp.eq.s32.totalorder %s2492_s10, 7  ;;  %p2513_p11 = por %p80_p6, %p55_p4 }
  0x36   : > { %p1571_p12 = scmp.ge.s32.totalorder %s2340_s25, 1  ;;  %p169_p0 = scmp.lt.s32.totalorder %s2340_s25, 9 }
  0x37   : > { %s2889_s13 = scalar_select %p2513_p11, 1, 0 }
  0x38   : > { %p2518_p13 = por %p156_p10, %p155_p9  ;;  %s2865_s29 = sshll.u32 %s2328_s22, 10 }
  0x39   : > { %p2524_p1 = pnand %p1571_p12, %p169_p0  ;;  %s2892_s0 = sld [smem:[#allocation22_spill]] }
  0x3a   : > { %s2890_s18 = scalar_select %p2518_p13, 1, 0 }
  0x3b   : > { %s2891_s14 = scalar_select %p2524_p1, 1, 0 }
  0x3c   : > { %s2345_s6 = smov [#allocation3]   ;;  %p1769_p2 = pneg %p2524_p1 }
  0x3d   : > { %s185_s7 = sshll.u32 %s2345_s6, 4  ;;  %s225_s1 = scalar_lea.vmem [#allocation8], %s2460_s9  ;;  %s2537_s7 = int_to_ptr.vmem [resolvable:$true] %s185_s7 }
  0x3e   : > { %s233_s2 = sshll.u32 %s225_s1, 4  ;;  %p2542_p3 = pnand %p1769_p2, %p2504_p5  ;;  %s234_s2 = int_to_ptr.vmem [resolvable:$true] %s233_s2 }
  0x3f   : > { %s2533_s11 = scalar_lea.hbm %s2892_s0, %s2865_s29  ;;  %s2141_s24 = scalar_lea.vmem %s234_s2, 4096 }
  0x40   : > { %p2142_p4 = scmp.ne.s32.totalorder %s234_s2, %s2141_s24  ;;  %s2346_s15 = smov [#allocation8]  }
  0x41   : > { %s2146_s6 = sshll.u32 %s2346_s15, 4  ;;  %s2147_s6 = int_to_ptr.vmem [resolvable:$false] %s2146_s6 }
  0x42   : > { %p2144_p6 = pnand %p2142_p4, %p2867_p8  ;;  %s2148_s28 = scalar_lea.vmem %s2147_s6, 8192 }
  0x43   : > { %p2149_p10 = scmp.lt.s32.totalorder %s234_s2, %s2147_s6  ;;  %p2150_p12 = scmp.lt.s32.totalorder %s2148_s28, %s2141_s24 }
  0x44   : > { %p2145_p9 = pneg %p2144_p6 }
  0x45   : > { %p2151_p0 = por %p2150_p12, %p2149_p10 }
  0x47   : > { %p2152_p13 = pnand %p2151_p0, %p2145_p9 }
  0x49   : > { %2155 = shalt.err (!%p2152_p13)
}
  0x4a   : > { %s2894_s1 = smov 8   ;;  %s2895_s29 = smov 128  }
  0x4b   : > { %1779 = dma.hbm_to_vmem [thread:$0]  (!%p2469_p7), %s2476_s8, 4096, %s234_s2, %s2478_s5, %s2895_s29, %s2895_s29, %s2894_s1  }
  0x4c   : > { %s2156_s15 = scalar_lea.hbm %s2533_s11, 1024  ;;  %p2158_p4 = pneg %p2542_p3 }
  0x4d   : > { %p2157_p2 = scmp.ne.s32.totalorder %s2533_s11, %s2156_s15  ;;  %s2161_s28 = scalar_lea.hbm %s2892_s0, 2048 }
  0x4e   : > { %p2162_p13 = scmp.lt.s32.totalorder %s2533_s11, %s2892_s0  ;;  %p2163_p9 = scmp.lt.s32.totalorder %s2161_s28, %s2156_s15 }
  0x4f   : > { %p2159_p6 = pnand %p2158_p4, %p2157_p2 }
  0x50   : > { %p2164_p12 = por %p2163_p9, %p2162_p13 }
  0x51   : > { %p2160_p10 = pneg %p2159_p6 }
  0x53   : > { %p2165_p0 = pnand %p2164_p12, %p2160_p10 }
  0x55   : > { %2168 = shalt.err (!%p2165_p0)
}
  0x56   : > { %s2169_s2 = scalar_lea.vmem %s2537_s7, 1024  ;;  %p2177_p6 = scmp.lt.s32.totalorder %s2537_s7, %s2537_s7 }
  0x57   : > { %p2170_p8 = scmp.ne.s32.totalorder %s2537_s7, %s2169_s2  ;;  %p2178_p5 = scmp.lt.s32.totalorder %s2169_s2, %s2169_s2 }
  0x59   : > { %p2172_p11 = pnand %p2170_p8, %p2158_p4  ;;  %p2179_p1 = por %p2178_p5, %p2177_p6 }
  0x5b   : > { %p2173_p2 = pneg %p2172_p11 }
  0x5d   : > { %p2180_p7 = pnand %p2179_p1, %p2173_p2 }
  0x5f   : > { %2183 = shalt.err (!%p2180_p7)
}
  0x60   : > { %1772 = dma.hbm_to_vmem [thread:$0]  (!%p2542_p3), %s2533_s11, 1024, %s2537_s7, [#allocation4], %s2895_s29, %s2895_s29, %s2894_s1  }
  0x61   : > { %s1716_s20 = sshll.u32 %s2332_s23, 7  ;;  %s247_s5 = scalar_lea.vmem [#allocation9], %s2460_s9 }
  0x62   : > { %s254_s8 = sshll.u32 %s247_s5, 4  ;;  %s253_s24 = scalar_lea.hbm %s2854_s3, %s1716_s20  ;;  %s255_s8 = int_to_ptr.vmem [resolvable:$true] %s254_s8 }
  0x63   : > { %s2896_s6 = sand.u32 1, %s2308_s17   ;;  %s2197_s28 = scalar_lea.vmem %s255_s8, 4096 }
  0x64   : > { %s244_s27 = scalar_lea.sflag [#allocation10], %s2896_s6  ;;  %p2198_p7 = scmp.ne.s32.totalorder %s255_s8, %s2197_s28 }
  0x65   : > { %p2897_p8 = scmp.ne.s32.totalorder %s2884_s26, 0  ;;  %s2347_s2 = smov [#allocation9]  }
  0x66   : > { %s2202_s0 = sshll.u32 %s2347_s2, 4  ;;  %s2203_s0 = int_to_ptr.vmem [resolvable:$false] %s2202_s0 }
  0x67   : > { %p2898_p5 = pneg %p2897_p8  ;;  %s2204_s7 = scalar_lea.vmem %s2203_s0, 8192 }
  0x68   : > { %p2205_p3 = scmp.lt.s32.totalorder %s255_s8, %s2203_s0  ;;  %p2206_p4 = scmp.lt.s32.totalorder %s2204_s7, %s2197_s28 }
  0x69   : > { %p2200_p11 = pnand %p2198_p7, %p2898_p5 }
  0x6a   : > { %p2207_p10 = por %p2206_p4, %p2205_p3 }
  0x6b   : > { %p2201_p1 = pneg %p2200_p11 }
  0x6d   : > { %p2208_p13 = pnand %p2207_p10, %p2201_p1 }
  0x6f   : > { %2211 = shalt.err (!%p2208_p13)
}
  0x70   : > { %s2348_s9 = smov 512   ;;  %p2899_p9 = scmp.ne.s32.totalorder %s2891_s14, 0 }
  0x71   : > { %1782 = dma.hbm_to_vmem [thread:$0]  (!%p2897_p8), %s253_s24, 4096, %s255_s8, %s244_s27, %s2348_s9, %s2895_s29, %s2894_s1  }
  0x72   : > { %266 = sbr.rel (%p2899_p9) target bundleno = 776 (0x308), region = 36  ;;  %p2900_p12 = scmp.ne.s32.totalorder (!%p2899_p9), %s2888_s12, 0 }
  0x77   : > { %2283 = dma.done.wait (%p2900_p12), [#allocation4], 1024  }
  0x78   : > { %2285 = vsyncadd (%p2900_p12), [#allocation4], 4294966272  ;;  %s272_s0 = sand.u32 1, %s2492_s10   ;;  %s274_s11 = sand.u32 1, %s2304_s16  }
  0x79   : > { %s1588_s20 = sshll.u32 %s274_s11, 8  ;;  %s273_s5 = scalar_lea.sflag [#allocation7], %s272_s0 }
  0x7a   : > { %s2600_s26 = scalar_lea.vmem [#allocation6], %s1588_s20  ;;  %p2901_p0 = scmp.ne.s32.totalorder %s2889_s13, 0 }
  0x7c   : > { %2287 = dma.done.wait (%p2901_p0), %s273_s5, 8192  }
  0x7d   : > { %2289 = vsyncadd (%p2901_p0), %s273_s5, 4294959104  ;;  %s2606_s29 = scalar_lea.vmem [#allocation8], %s1588_s20  ;;  %s291_s14 = scalar_lea.sflag [#allocation10], %s274_s11 }
  0x7e   : > { %s2608_s12 = scalar_lea.vmem [#allocation9], %s1588_s20 }
  0x7f   : > { %2291 = dma.done.wait (%p2901_p0), %s291_s14, 4096  }
  0x80   : > { %2293 = vsyncadd (%p2901_p0), %s291_s14, 4294963200  ;;  %p1591_p2 = scmp.ne.s32.totalorder %s2324_s21, 0 }
  0x82   : > { %332 = sbr.rel (%p1591_p2) target bundleno = 144 (0x90), region = 56 }
  0x87   : > { %v2349_v0 = vmov 0.0  }
  0x88   : > { %333 = vst [vmem:[#allocation2 + $0x30] sm:$0xff] %v2349_v0  ;;  %334 = vst [vmem:[#allocation2] sm:$0xff] %v2349_v0 }
  0x89   : > { %335 = vst [vmem:[#allocation2 + $0x58] sm:$0xff] %v2349_v0  ;;  %336 = vst [vmem:[#allocation2 + $0x18] sm:$0xff] %v2349_v0 }
  0x8a   : > { %337 = vst [vmem:[#allocation2 + $0x50] sm:$0xff] %v2349_v0  ;;  %338 = vst [vmem:[#allocation2 + $0x68] sm:$0xff] %v2349_v0 }
  0x8b   : > { %339 = vst [vmem:[#allocation2 + $0x8] sm:$0xff] %v2349_v0  ;;  %340 = vst [vmem:[#allocation2 + $0x48] sm:$0xff] %v2349_v0 }
  0x8c   : > { %341 = vst [vmem:[#allocation2 + $0x40] sm:$0xff] %v2349_v0  ;;  %342 = vst [vmem:[#allocation2 + $0x20] sm:$0xff] %v2349_v0 }
  0x8d   : > { %343 = vst [vmem:[#allocation2 + $0x10] sm:$0xff] %v2349_v0  ;;  %344 = vst [vmem:[#allocation2 + $0x38] sm:$0xff] %v2349_v0 }
  0x8e   : > { %345 = vst [vmem:[#allocation2 + $0x60] sm:$0xff] %v2349_v0  ;;  %346 = vst [vmem:[#allocation2 + $0x70] sm:$0xff] %v2349_v0 }
  0x8f   : > { %347 = vst [vmem:[#allocation2 + $0x78] sm:$0xff] %v2349_v0  ;;  %348 = vst [vmem:[#allocation2 + $0x28] sm:$0xff] %v2349_v0 }
  0x90 PF: > { %v1880_v1 = vld [vmem:[%s2600_s26 + $0x74] ss:$8 sps:$4 sm:$0xff]   ;;  %v1882_v2 = vld [vmem:[%s2600_s26 + $0x70] ss:$8 sps:$4 sm:$0xff]   ;;  %v1883_v3 = vld [vmem:[%s2600_s26 + $0x64] ss:$8 sps:$4 sm:$0xff]  }
  0x91   : > { %653 = vmatprep.subr.bf16.mxu0 %v1880_v1  ;;  %v1892_v4 = vld [vmem:[%s2606_s29 + $0x74] ss:$8 sps:$4 sm:$0xff]   ;;  %v1894_v5 = vld [vmem:[%s2606_s29 + $0x70] ss:$8 sps:$4 sm:$0xff]   ;;  %v1885_v6 = vld [vmem:[%s2600_s26 + $0x60] ss:$8 sps:$4 sm:$0xff]  }
  0x92   : > { %654 = vmatpush1.bf16.xpose.msra.mxu0 %v1882_v2  ;;  %v1886_v7 = vld [vmem:[%s2600_s26 + $0x54] ss:$8 sps:$4 sm:$0xff]   ;;  %886 = vmatprep.subr.bf16.mxu1 %v1892_v4  ;;  %v1898_v8 = vld [vmem:[%s2606_s29 + $0x64] ss:$8 sps:$4 sm:$0xff]   ;;  %v1900_v9 = vld [vmem:[%s2606_s29 + $0x60] ss:$8 sps:$4 sm:$0xff]  }
  0x93   : > { %655 = vmatprep.subr.bf16.mxu0 %v1883_v3  ;;  %887 = vmatpush1.bf16.xpose.msra.mxu1 %v1894_v5  ;;  %v1904_v10 = vld [vmem:[%s2606_s29 + $0x54] ss:$8 sps:$4 sm:$0xff]   ;;  %v1888_v11 = vld [vmem:[%s2600_s26 + $0x50] ss:$8 sps:$4 sm:$0xff]   ;;  %v1889_v12 = vld [vmem:[%s2600_s26 + $0x44] ss:$8 sps:$4 sm:$0xff]  }
  0x94   : > { %888 = vmatprep.subr.bf16.mxu1 %v1898_v8  ;;  %v1906_v13 = vld [vmem:[%s2606_s29 + $0x50] ss:$8 sps:$4 sm:$0xff]   ;;  %v1910_v14 = vld [vmem:[%s2606_s29 + $0x44] ss:$8 sps:$4 sm:$0xff]   ;;  %v1891_v15 = vld [vmem:[%s2600_s26 + $0x40] ss:$8 sps:$4 sm:$0xff]  }
  0x95   : > { %v1895_v16 = vld [vmem:[%s2600_s26 + $0x34] ss:$8 sps:$4 sm:$0xff]   ;;  %v1912_v17 = vld [vmem:[%s2606_s29 + $0x40] ss:$8 sps:$4 sm:$0xff]   ;;  %v1897_v19 = vld [vmem:[%s2600_s26 + $0x30] ss:$8 sps:$4 sm:$0xff]  }
  0x96   : > { %v1916_v18 = vld [vmem:[%s2606_s29 + $0x34] ss:$8 sps:$4 sm:$0xff]   ;;  %v1901_v20 = vld [vmem:[%s2600_s26 + $0x24] ss:$8 sps:$4 sm:$0xff]   ;;  %v1918_v21 = vld [vmem:[%s2606_s29 + $0x30] ss:$8 sps:$4 sm:$0xff]  }
  0x97   : > { %v1922_v22 = vld [vmem:[%s2606_s29 + $0x24] ss:$8 sps:$4 sm:$0xff]   ;;  %v1903_v23 = vld [vmem:[%s2600_s26 + $0x20] ss:$8 sps:$4 sm:$0xff]   ;;  %v1907_v25 = vld [vmem:[%s2600_s26 + $0x14] ss:$8 sps:$4 sm:$0xff]  }
  0x98   : > { %v1968_v24 = vld [vmem:[#allocation3 + $0x4] ss:$8 sps:$4 sm:$0xff]   ;;  %v1924_v26 = vld [vmem:[%s2606_s29 + $0x20] ss:$8 sps:$4 sm:$0xff]   ;;  %v1928_v27 = vld [vmem:[%s2606_s29 + $0x14] ss:$8 sps:$4 sm:$0xff]  }
  0x99   : > { %685 = vmatprep.mubr.bf16.mxu0 %v1968_v24  ;;  %918 = vmatprep.mubr.bf16.mxu1 %v1968_v24  ;;  %v1909_v28 = vld [vmem:[%s2600_s26 + $0x10] ss:$8 sps:$4 sm:$0xff]   ;;  %v1913_v29 = vld [vmem:[%s2600_s26 + $0x4] ss:$8 sps:$4 sm:$0xff]   ;;  %v1915_v32 = vld [vmem:[%s2600_s26] ss:$8 sps:$4 sm:$0xff]  }
  0x9a   : > { %656 = vmatpush1.bf16.xpose.msra.mxu0 %v1885_v6  ;;  %v1930_v30 = vld [vmem:[%s2606_s29 + $0x10] ss:$8 sps:$4 sm:$0xff]   ;;  %v1934_v31 = vld [vmem:[%s2606_s29 + $0x4] ss:$8 sps:$4 sm:$0xff]   ;;  %v1919_v33 = vld [vmem:[%s2600_s26 + $0xf4] ss:$8 sps:$4 sm:$0xff]  }
  0x9b   : > { %657 = vmatprep.subr.bf16.mxu0 %v1886_v7  ;;  %889 = vmatpush1.bf16.xpose.msra.mxu1 %v1900_v9  ;;  %v1936_v34 = vld [vmem:[%s2606_s29] ss:$8 sps:$4 sm:$0xff]   ;;  %v1940_v35 = vld [vmem:[%s2606_s29 + $0xf4] ss:$8 sps:$4 sm:$0xff]   ;;  %v1921_v36 = vld [vmem:[%s2600_s26 + $0xf0] ss:$8 sps:$4 sm:$0xff]  }
  0x9c   : > { %890 = vmatprep.subr.bf16.mxu1 %v1904_v10  ;;  %v1925_v37 = vld [vmem:[%s2600_s26 + $0xe4] ss:$8 sps:$4 sm:$0xff]   ;;  %v1942_v38 = vld [vmem:[%s2606_s29 + $0xf0] ss:$8 sps:$4 sm:$0xff]   ;;  %v1927_v40 = vld [vmem:[%s2600_s26 + $0xe0] ss:$8 sps:$4 sm:$0xff]  }
  0x9d   : > { %v1946_v39 = vld [vmem:[%s2606_s29 + $0xe4] ss:$8 sps:$4 sm:$0xff]   ;;  %v1931_v41 = vld [vmem:[%s2600_s26 + $0xd4] ss:$8 sps:$4 sm:$0xff]   ;;  %v1948_v42 = vld [vmem:[%s2606_s29 + $0xe0] ss:$8 sps:$4 sm:$0xff]  }
  0x9e   : > { %v1952_v43 = vld [vmem:[%s2606_s29 + $0xd4] ss:$8 sps:$4 sm:$0xff]   ;;  %v1933_v44 = vld [vmem:[%s2600_s26 + $0xd0] ss:$8 sps:$4 sm:$0xff]   ;;  %v1937_v45 = vld [vmem:[%s2600_s26 + $0xc4] ss:$8 sps:$4 sm:$0xff]  }
  0x9f   : > { %v1954_v46 = vld [vmem:[%s2606_s29 + $0xd0] ss:$8 sps:$4 sm:$0xff]   ;;  %v1958_v47 = vld [vmem:[%s2606_s29 + $0xc4] ss:$8 sps:$4 sm:$0xff]   ;;  %v1939_v48 = vld [vmem:[%s2600_s26 + $0xc0] ss:$8 sps:$4 sm:$0xff]  }
  0xa0   : > { %v1943_v49 = vld [vmem:[%s2600_s26 + $0xb4] ss:$8 sps:$4 sm:$0xff]   ;;  %v1960_v50 = vld [vmem:[%s2606_s29 + $0xc0] ss:$8 sps:$4 sm:$0xff]   ;;  %v1945_v52 = vld [vmem:[%s2600_s26 + $0xb0] ss:$8 sps:$4 sm:$0xff]  }
  0xa1   : > { %v1964_v51 = vld [vmem:[%s2606_s29 + $0xb4] ss:$8 sps:$4 sm:$0xff]   ;;  %v1949_v53 = vld [vmem:[%s2600_s26 + $0xa4] ss:$8 sps:$4 sm:$0xff]   ;;  %v1969_v54 = vld [vmem:[%s2606_s29 + $0xb0] ss:$8 sps:$4 sm:$0xff]  }
  0xa2   : > { %658 = vmatpush1.bf16.xpose.msra.mxu0 %v1888_v11  ;;  %v1970_v55 = vld [vmem:[%s2606_s29 + $0xa4] ss:$8 sps:$4 sm:$0xff]   ;;  %v1951_v56 = vld [vmem:[%s2600_s26 + $0xa0] ss:$8 sps:$4 sm:$0xff]   ;;  %v1955_v57 = vld [vmem:[%s2600_s26 + $0x94] ss:$8 sps:$4 sm:$0xff]  }
  0xa3   : > { %659 = vmatprep.subr.bf16.mxu0 %v1889_v12  ;;  %891 = vmatpush1.bf16.xpose.msra.mxu1 %v1906_v13  ;;  %v1974_v58 = vld [vmem:[%s2606_s29 + $0xa0] ss:$8 sps:$4 sm:$0xff]   ;;  %v1976_v59 = vld [vmem:[%s2606_s29 + $0x94] ss:$8 sps:$4 sm:$0xff]   ;;  %v1957_v60 = vld [vmem:[%s2600_s26 + $0x90] ss:$8 sps:$4 sm:$0xff]  }
  0xa4   : > { %892 = vmatprep.subr.bf16.mxu1 %v1910_v14  ;;  %v1961_v61 = vld [vmem:[%s2600_s26 + $0x84] ss:$8 sps:$4 sm:$0xff]   ;;  %v1980_v62 = vld [vmem:[%s2606_s29 + $0x90] ss:$8 sps:$4 sm:$0xff]   ;;  %v1963_v0 = vld [vmem:[%s2600_s26 + $0x80] ss:$8 sps:$4 sm:$0xff]  }
  0xa5   : > { %v1982_v63 = vld [vmem:[%s2606_s29 + $0x84] ss:$8 sps:$4 sm:$0xff]   ;;  %v1990_v1 = vld [vmem:[%s2608_s12 + $0x74] ss:$8 sps:$4 sm:$0xff]   ;;  %v1986_v2 = vld [vmem:[%s2606_s29 + $0x80] ss:$8 sps:$4 sm:$0xff]  }
  0xa6   : > { %v1966_v3 = vld [vmem:[#allocation3] ss:$8 sps:$4 sm:$0xff]   ;;  %v1972_v4 = vld [vmem:[#allocation3 + $0x14] ss:$8 sps:$4 sm:$0xff]   ;;  %v1988_v5 = vld [vmem:[%s2608_s12 + $0x70] ss:$8 sps:$4 sm:$0xff]  }
  0xa7   : > { %v1993_v6 = vld [vmem:[%s2608_s12 + $0x64] ss:$8 sps:$4 sm:$0xff]   ;;  %v1975_v7 = vld [vmem:[#allocation3 + $0x10] ss:$8 sps:$4 sm:$0xff]   ;;  %v1991_v9 = vld [vmem:[%s2608_s12 + $0x60] ss:$8 sps:$4 sm:$0xff]  }
  0xa8   : > { %v1978_v8 = vld [vmem:[#allocation3 + $0x24] ss:$8 sps:$4 sm:$0xff]   ;;  %v1996_v10 = vld [vmem:[%s2608_s12 + $0x54] ss:$8 sps:$4 sm:$0xff]   ;;  %v1981_v11 = vld [vmem:[#allocation3 + $0x20] ss:$8 sps:$4 sm:$0xff]  }
  0xa9   : > { %v1984_v12 = vld [vmem:[#allocation3 + $0x34] ss:$8 sps:$4 sm:$0xff]   ;;  %v1994_v13 = vld [vmem:[%s2608_s12 + $0x50] ss:$8 sps:$4 sm:$0xff]   ;;  %v1999_v14 = vld [vmem:[%s2608_s12 + $0x44] ss:$8 sps:$4 sm:$0xff]  }
  0xaa   : > { %660 = vmatpush1.bf16.xpose.msra.mxu0 %v1891_v15  ;;  %v1987_v15 = vld [vmem:[#allocation3 + $0x30] ss:$8 sps:$4 sm:$0xff]   ;;  %v2009_v24 = vld [vmem:[%s2608_s12] ss:$8 sps:$4 sm:$0xff]   ;;  %p1696_p6 = scmp.ne.s32.totalorder %s2324_s21, 3 }
  0xab   : > { %661 = vmatprep.subr.bf16.mxu0 %v1895_v16  ;;  %893 = vmatpush1.bf16.xpose.msra.mxu1 %v1912_v17  ;;  %v1997_v16 = vld [vmem:[%s2608_s12 + $0x40] ss:$8 sps:$4 sm:$0xff]   ;;  %v2002_v17 = vld [vmem:[%s2608_s12 + $0x34] ss:$8 sps:$4 sm:$0xff]  }
  0xac   : > { %894 = vmatprep.subr.bf16.mxu1 %v1916_v18  ;;  %v2000_v18 = vld [vmem:[%s2608_s12 + $0x30] ss:$8 sps:$4 sm:$0xff]  }
  0xb2   : > { %662 = vmatpush1.bf16.xpose.msra.mxu0 %v1897_v19  ;;  %v2005_v19 = vld [vmem:[%s2608_s12 + $0x24] ss:$8 sps:$4 sm:$0xff]  }
  0xb3   : > { %663 = vmatprep.subr.bf16.mxu0 %v1901_v20  ;;  %895 = vmatpush1.bf16.xpose.msra.mxu1 %v1918_v21  ;;  %v2003_v20 = vld [vmem:[%s2608_s12 + $0x20] ss:$8 sps:$4 sm:$0xff]   ;;  %v2008_v21 = vld [vmem:[%s2608_s12 + $0x14] ss:$8 sps:$4 sm:$0xff]  }
  0xb4   : > { %896 = vmatprep.subr.bf16.mxu1 %v1922_v22  ;;  %v2006_v22 = vld [vmem:[%s2608_s12 + $0x10] ss:$8 sps:$4 sm:$0xff]  }
  0xba   : > { %664 = vmatpush1.bf16.xpose.msra.mxu0 %v1903_v23  ;;  %v2011_v23 = vld [vmem:[%s2608_s12 + $0x4] ss:$8 sps:$4 sm:$0xff]  }
  0xbb   : > { %665 = vmatprep.subr.bf16.mxu0 %v1907_v25  ;;  %897 = vmatpush1.bf16.xpose.msra.mxu1 %v1924_v26  ;;  %v2014_v25 = vld [vmem:[%s2608_s12 + $0xf4] ss:$8 sps:$4 sm:$0xff]   ;;  %v2012_v26 = vld [vmem:[%s2608_s12 + $0xf0] ss:$8 sps:$4 sm:$0xff]  }
  0xbc   : > { %898 = vmatprep.subr.bf16.mxu1 %v1928_v27  ;;  %v2017_v27 = vld [vmem:[%s2608_s12 + $0xe4] ss:$8 sps:$4 sm:$0xff]  }
  0xc2   : > { %666 = vmatpush1.bf16.xpose.msra.mxu0 %v1909_v28  ;;  %v2015_v28 = vld [vmem:[%s2608_s12 + $0xe0] ss:$8 sps:$4 sm:$0xff]  }
  0xc3   : > { %667 = vmatprep.subr.bf16.mxu0 %v1913_v29  ;;  %899 = vmatpush1.bf16.xpose.msra.mxu1 %v1930_v30  ;;  %v2020_v29 = vld [vmem:[%s2608_s12 + $0xd4] ss:$8 sps:$4 sm:$0xff]   ;;  %v2018_v30 = vld [vmem:[%s2608_s12 + $0xd0] ss:$8 sps:$4 sm:$0xff]  }
  0xc4   : > { %900 = vmatprep.subr.bf16.mxu1 %v1934_v31  ;;  %v2023_v31 = vld [vmem:[%s2608_s12 + $0xc4] ss:$8 sps:$4 sm:$0xff]  }
  0xca   : > { %668 = vmatpush1.bf16.xpose.msra.mxu0 %v1915_v32  ;;  %v2021_v32 = vld [vmem:[%s2608_s12 + $0xc0] ss:$8 sps:$4 sm:$0xff]  }
  0xcb   : > { %669 = vmatprep.subr.bf16.mxu0 %v1919_v33  ;;  %901 = vmatpush1.bf16.xpose.msra.mxu1 %v1936_v34  ;;  %v2026_v33 = vld [vmem:[%s2608_s12 + $0xb4] ss:$8 sps:$4 sm:$0xff]   ;;  %v2024_v34 = vld [vmem:[%s2608_s12 + $0xb0] ss:$8 sps:$4 sm:$0xff]  }
  0xcc   : > { %902 = vmatprep.subr.bf16.mxu1 %v1940_v35  ;;  %v2029_v35 = vld [vmem:[%s2608_s12 + $0xa4] ss:$8 sps:$4 sm:$0xff]  }
  0xd2   : > { %670 = vmatpush2.bf16.xpose.msra.mxu0 %v1921_v36  ;;  %v2027_v36 = vld [vmem:[%s2608_s12 + $0xa0] ss:$8 sps:$4 sm:$0xff]  }
  0xd3   : > { %671 = vmatprep.subr.bf16.mxu0 %v1925_v37  ;;  %903 = vmatpush2.bf16.xpose.msra.mxu1 %v1942_v38  ;;  %v2032_v37 = vld [vmem:[%s2608_s12 + $0x94] ss:$8 sps:$4 sm:$0xff]   ;;  %v2030_v38 = vld [vmem:[%s2608_s12 + $0x90] ss:$8 sps:$4 sm:$0xff]  }
  0xd4   : > { %904 = vmatprep.subr.bf16.mxu1 %v1946_v39  ;;  %v2035_v39 = vld [vmem:[%s2608_s12 + $0x84] ss:$8 sps:$4 sm:$0xff]  }
  0xda   : > { %672 = vmatpush2.bf16.xpose.msra.mxu0 %v1927_v40  ;;  %v2033_v40 = vld [vmem:[%s2608_s12 + $0x80] ss:$8 sps:$4 sm:$0xff]  }
  0xdb   : > { %673 = vmatprep.subr.bf16.mxu0 %v1931_v41  ;;  %905 = vmatpush2.bf16.xpose.msra.mxu1 %v1948_v42 }
  0xdc   : > { %906 = vmatprep.subr.bf16.mxu1 %v1952_v43 }
  0xe2   : > { %674 = vmatpush2.bf16.xpose.msra.mxu0 %v1933_v44 }
  0xe3   : > { %675 = vmatprep.subr.bf16.mxu0 %v1937_v45  ;;  %907 = vmatpush2.bf16.xpose.msra.mxu1 %v1954_v46 }
  0xe4   : > { %908 = vmatprep.subr.bf16.mxu1 %v1958_v47 }
  0xea   : > { %676 = vmatpush2.bf16.xpose.msra.mxu0 %v1939_v48 }
  0xeb   : > { %677 = vmatprep.subr.bf16.mxu0 %v1943_v49  ;;  %909 = vmatpush2.bf16.xpose.msra.mxu1 %v1960_v50 }
  0xec   : > { %910 = vmatprep.subr.bf16.mxu1 %v1964_v51 }
  0xf2   : > { %678 = vmatpush2.bf16.xpose.msra.mxu0 %v1945_v52 }
  0xf3   : > { %679 = vmatprep.subr.bf16.mxu0 %v1949_v53  ;;  %911 = vmatpush2.bf16.xpose.msra.mxu1 %v1969_v54 }
  0xf4   : > { %912 = vmatprep.subr.bf16.mxu1 %v1970_v55 }
  0xfa   : > { %680 = vmatpush2.bf16.xpose.msra.mxu0 %v1951_v56 }
  0xfb   : > { %681 = vmatprep.subr.bf16.mxu0 %v1955_v57  ;;  %913 = vmatpush2.bf16.xpose.msra.mxu1 %v1974_v58 }
  0xfc   : > { %914 = vmatprep.subr.bf16.mxu1 %v1976_v59 }
 0x102   : > { %682 = vmatpush2.bf16.xpose.msra.mxu0 %v1957_v60 }
 0x103   : > { %683 = vmatprep.subr.bf16.mxu0 %v1961_v61  ;;  %915 = vmatpush2.bf16.xpose.msra.mxu1 %v1980_v62 }
 0x104   : > { %916 = vmatprep.subr.bf16.mxu1 %v1982_v63 }
 0x10a   : > { %684 = vmatpush2.bf16.xpose.msra.mxu0 %v1963_v0 }
 0x10b   : > { %1255 = vmatprep.subr.bf16.mxu0 %v1990_v1  ;;  %917 = vmatpush2.bf16.xpose.msra.mxu1 %v1986_v2 }
 0x10c   : > { %1727 = vmatprep.subr.bf16.mxu1 %v1990_v1 }
 0x111   : > { %686 = vmatmul.mubr.bf16.vlgmr.msra.gmra.mxu0 %v1966_v3 }
 0x112   : > { %695 = vmatprep.mubr.bf16.mxu0 %v1972_v4  ;;  %1256 = vmatpush1.bf16.xpose.msra.mxu0 %v1988_v5 }
 0x113   : > { %1257 = vmatprep.subr.bf16.mxu0 %v1993_v6  ;;  %919 = vmatmul.mubr.bf16.vlgmr.msra.gmra.mxu1 %v1966_v3 }
 0x114   : > { %928 = vmatprep.mubr.bf16.mxu1 %v1972_v4  ;;  %1743 = vmatpush1.bf16.xpose.msra.mxu1 %v1988_v5 }
 0x115   : > { %1728 = vmatprep.subr.bf16.mxu1 %v1993_v6 }
 0x119   : > { %696 = vmatmul.mubr.bf16.gmra.mxu0 %v1975_v7 }
 0x11a   : > { %705 = vmatprep.mubr.bf16.mxu0 %v1978_v8  ;;  %1258 = vmatpush1.bf16.xpose.msra.mxu0 %v1991_v9 }
 0x11b   : > { %1259 = vmatprep.subr.bf16.mxu0 %v1996_v10  ;;  %929 = vmatmul.mubr.bf16.gmra.mxu1 %v1975_v7 }
 0x11c   : > { %938 = vmatprep.mubr.bf16.mxu1 %v1978_v8  ;;  %1744 = vmatpush1.bf16.xpose.msra.mxu1 %v1991_v9 }
 0x11d   : > { %1729 = vmatprep.subr.bf16.mxu1 %v1996_v10 }
 0x121   : > { %706 = vmatmul.mubr.bf16.gmra.mxu0 %v1981_v11 }
 0x122   : > { %715 = vmatprep.mubr.bf16.mxu0 %v1984_v12  ;;  %1260 = vmatpush1.bf16.xpose.msra.mxu0 %v1994_v13 }
 0x123   : > { %1261 = vmatprep.subr.bf16.mxu0 %v1999_v14  ;;  %939 = vmatmul.mubr.bf16.gmra.mxu1 %v1981_v11 }
 0x124   : > { %948 = vmatprep.mubr.bf16.mxu1 %v1984_v12  ;;  %1745 = vmatpush1.bf16.xpose.msra.mxu1 %v1994_v13 }
 0x125   : > { %1730 = vmatprep.subr.bf16.mxu1 %v1999_v14 }
 0x129   : > { %716 = vmatmul.mubr.bf16.gmra.mxu0 %v1987_v15 }
 0x12a   : > { %1262 = vmatpush1.bf16.xpose.msra.mxu0 %v1997_v16 }
 0x12b   : > { %1263 = vmatprep.subr.bf16.mxu0 %v2002_v17  ;;  %949 = vmatmul.mubr.bf16.gmra.mxu1 %v1987_v15 }
 0x12c   : > { %1746 = vmatpush1.bf16.xpose.msra.mxu1 %v1997_v16 }
 0x12d   : > { %1731 = vmatprep.subr.bf16.mxu1 %v2002_v17 }
 0x132   : > { %1264 = vmatpush1.bf16.xpose.msra.mxu0 %v2000_v18 }
 0x133   : > { %1265 = vmatprep.subr.bf16.mxu0 %v2005_v19 }
 0x134   : > { %1747 = vmatpush1.bf16.xpose.msra.mxu1 %v2000_v18 }
 0x135   : > { %1732 = vmatprep.subr.bf16.mxu1 %v2005_v19 }
 0x13a   : > { %1266 = vmatpush1.bf16.xpose.msra.mxu0 %v2003_v20 }
 0x13b   : > { %1267 = vmatprep.subr.bf16.mxu0 %v2008_v21 }
 0x13c   : > { %1748 = vmatpush1.bf16.xpose.msra.mxu1 %v2003_v20 }
 0x13d   : > { %1733 = vmatprep.subr.bf16.mxu1 %v2008_v21 }
 0x142   : > { %1268 = vmatpush1.bf16.xpose.msra.mxu0 %v2006_v22 }
 0x143   : > { %1269 = vmatprep.subr.bf16.mxu0 %v2011_v23 }
 0x144   : > { %1749 = vmatpush1.bf16.xpose.msra.mxu1 %v2006_v22 }
 0x145   : > { %1734 = vmatprep.subr.bf16.mxu1 %v2011_v23 }
 0x14a   : > { %1270 = vmatpush1.bf16.xpose.msra.mxu0 %v2009_v24 }
 0x14b   : > { %1271 = vmatprep.subr.bf16.mxu0 %v2014_v25 }
 0x14c   : > { %1750 = vmatpush1.bf16.xpose.msra.mxu1 %v2009_v24 }
 0x14d   : > { %1735 = vmatprep.subr.bf16.mxu1 %v2014_v25 }
 0x152   : > { %1272 = vmatpush2.bf16.xpose.msra.mxu0 %v2012_v26 }
 0x153   : > { %1273 = vmatprep.subr.bf16.mxu0 %v2017_v27 }
 0x154   : > { %1751 = vmatpush2.bf16.xpose.msra.mxu1 %v2012_v26 }
 0x155   : > { %1736 = vmatprep.subr.bf16.mxu1 %v2017_v27 }
 0x15a   : > { %1274 = vmatpush2.bf16.xpose.msra.mxu0 %v2015_v28 }
 0x15b   : > { %1275 = vmatprep.subr.bf16.mxu0 %v2020_v29 }
 0x15c   : > { %1752 = vmatpush2.bf16.xpose.msra.mxu1 %v2015_v28 }
 0x15d   : > { %1737 = vmatprep.subr.bf16.mxu1 %v2020_v29 }
 0x162   : > { %1276 = vmatpush2.bf16.xpose.msra.mxu0 %v2018_v30 }
 0x163   : > { %1277 = vmatprep.subr.bf16.mxu0 %v2023_v31 }
 0x164   : > { %1753 = vmatpush2.bf16.xpose.msra.mxu1 %v2018_v30 }
 0x165   : > { %1738 = vmatprep.subr.bf16.mxu1 %v2023_v31 }
 0x16a   : > { %1278 = vmatpush2.bf16.xpose.msra.mxu0 %v2021_v32 }
 0x16b   : > { %1279 = vmatprep.subr.bf16.mxu0 %v2026_v33 }
 0x16c   : > { %1754 = vmatpush2.bf16.xpose.msra.mxu1 %v2021_v32 }
 0x16d   : > { %1739 = vmatprep.subr.bf16.mxu1 %v2026_v33 }
 0x172   : > { %1280 = vmatpush2.bf16.xpose.msra.mxu0 %v2024_v34 }
 0x173   : > { %1281 = vmatprep.subr.bf16.mxu0 %v2029_v35 }
 0x174   : > { %1755 = vmatpush2.bf16.xpose.msra.mxu1 %v2024_v34 }
 0x175   : > { %1740 = vmatprep.subr.bf16.mxu1 %v2029_v35 }
 0x17a   : > { %1282 = vmatpush2.bf16.xpose.msra.mxu0 %v2027_v36 }
 0x17b   : > { %1283 = vmatprep.subr.bf16.mxu0 %v2032_v37 }
 0x17c   : > { %1756 = vmatpush2.bf16.xpose.msra.mxu1 %v2027_v36 }
 0x17d   : > { %1741 = vmatprep.subr.bf16.mxu1 %v2032_v37 }
 0x182   : > { %1284 = vmatpush2.bf16.xpose.msra.mxu0 %v2030_v38 }
 0x183   : > { %1285 = vmatprep.subr.bf16.mxu0 %v2035_v39 }
 0x184   : > { %1757 = vmatpush2.bf16.xpose.msra.mxu1 %v2030_v38 }
 0x185   : > { %1742 = vmatprep.subr.bf16.mxu1 %v2035_v39 }
 0x18a   : > { %1286 = vmatpush2.bf16.xpose.msra.mxu0 %v2033_v40 }
 0x18c   : > { %1758 = vmatpush2.bf16.xpose.msra.mxu1 %v2033_v40 }
 0x1d1   : > { %v2711_v41 = vpop.f32.mrf.mxu0 }
 0x1d2   : > { %v959_v42 = vsub.f32 0.0, %v2711_v41 }
 0x1d3   : > { %v2714_v43 = vpop.f32.mrf.mxu0  ;;  %v2723_v52 = vpop.f32.mrf.mxu1 }
 0x1d4   : > { %v975_v44 = vmul.f32 1.442695, %v959_v42  ;;  %v960_v45 = vsub.f32 0.0, %v2714_v43 }
 0x1d5   : > { %v2717_v46 = vpop.f32.mrf.mxu0  ;;  %v2731_v59 = vpop.f32.mrf.mxu1 }
 0x1d6   : > { %2036 = vpow2.f32 %v975_v44  ;;  %v977_v47 = vmul.f32 1.442695, %v960_v45  ;;  %v961_v48 = vsub.f32 0.0, %v2717_v46 }
 0x1d7   : > { %v2720_v49 = vpop.f32.mrf.mxu0  ;;  %v2739_v2 = vpop.f32.mrf.mxu1 }
 0x1d8   : > { %2038 = vpow2.f32 %v977_v47  ;;  %v979_v50 = vmul.f32 1.442695, %v961_v48  ;;  %v962_v51 = vsub.f32 0.0, %v2720_v49 }
 0x1d9   : > { %v2725_v53 = vpop.f32.mrf.mxu0  ;;  %v2747_v11 = vpop.f32.mrf.mxu1 }
 0x1da   : > { %2040 = vpow2.f32 %v979_v50  ;;  %v981_v54 = vmul.f32 1.442695, %v962_v51  ;;  %v963_v55 = vsub.f32 0.0, %v2725_v53 }
 0x1db   : > { %v2728_v56 = vpop.f32.mrf.mxu0  ;;  %v2755_v22 = vpop.f32.mrf.mxu1 }
 0x1dc   : > { %2042 = vpow2.f32 %v981_v54  ;;  %v983_v57 = vmul.f32 1.442695, %v963_v55  ;;  %v964_v58 = vsub.f32 0.0, %v2728_v56 }
 0x1dd   : > { %v2733_v60 = vpop.f32.mrf.mxu0  ;;  %v2763_v33 = vpop.f32.mrf.mxu1 }
 0x1de   : > { %2044 = vpow2.f32 %v983_v57  ;;  %v985_v61 = vmul.f32 1.442695, %v964_v58  ;;  %v965_v62 = vsub.f32 0.0, %v2733_v60 }
 0x1df   : > { %v2736_v63 = vpop.f32.mrf.mxu0  ;;  %v934_v47 = vpop.f32.mrf.mxu1 }
 0x1e0   : > { %2046 = vpow2.f32 %v985_v61  ;;  %v987_v0 = vmul.f32 1.442695, %v965_v62  ;;  %v966_v1 = vsub.f32 0.0, %v2736_v63 }
 0x1e1   : > { %v2741_v3 = vpop.f32.mrf.mxu0  ;;  %v936_v57 = vpop.f32.mrf.mxu1 }
 0x1e2   : > { %2048 = vpow2.f32 %v987_v0  ;;  %v989_v4 = vmul.f32 1.442695, %v966_v1  ;;  %v967_v5 = vsub.f32 0.0, %v2741_v3 }
 0x1e3   : > { %v2037_v6 = vpop.eup %2036  ;;  %v2744_v7 = vpop.f32.mrf.mxu0 }
 0x1e4   : > { %v1007_v8 = vadd.f32 1.0, %v2037_v6  ;;  %2050 = vpow2.f32 %v989_v4  ;;  %v991_v9 = vmul.f32 1.442695, %v967_v5  ;;  %v968_v10 = vsub.f32 0.0, %v2744_v7 }
 0x1e5   : > { %v2039_v12 = vpop.eup %2038  ;;  %v2749_v13 = vpop.f32.mrf.mxu0 }
 0x1e6   : > { %2052 = vrcp.f32 %v1007_v8  ;;  %v1008_v14 = vadd.f32 1.0, %v2039_v12  ;;  %v993_v15 = vmul.f32 1.442695, %v968_v10  ;;  %v969_v16 = vsub.f32 0.0, %v2749_v13  ;;  %v2773_v8 = vpop.f32.mrf.mxu1 }
 0x1e7   : > { %v2041_v17 = vpop.eup %2040  ;;  %2054 = vpow2.f32 %v991_v9  ;;  %v2752_v18 = vpop.f32.mrf.mxu0 }
 0x1e8   : > { %2056 = vrcp.f32 %v1008_v14  ;;  %v1009_v19 = vadd.f32 1.0, %v2041_v17  ;;  %v995_v20 = vmul.f32 1.442695, %v969_v16  ;;  %v970_v21 = vsub.f32 0.0, %v2752_v18 }
 0x1e9   : > { %v2043_v23 = vpop.eup %2042  ;;  %2058 = vpow2.f32 %v993_v15  ;;  %v2757_v24 = vpop.f32.mrf.mxu0 }
 0x1ea   : > { %2060 = vrcp.f32 %v1009_v19  ;;  %v1010_v25 = vadd.f32 1.0, %v2043_v23  ;;  %v997_v26 = vmul.f32 1.442695, %v970_v21  ;;  %v971_v27 = vsub.f32 0.0, %v2757_v24  ;;  %v942_v21 = vpop.f32.mrf.mxu1 }
 0x1eb   : > { %v2045_v28 = vpop.eup %2044  ;;  %2062 = vpow2.f32 %v995_v20  ;;  %v2760_v29 = vpop.f32.mrf.mxu0 }
 0x1ec   : > { %2064 = vrcp.f32 %v1010_v25  ;;  %v1011_v30 = vadd.f32 1.0, %v2045_v28  ;;  %v999_v31 = vmul.f32 1.442695, %v971_v27  ;;  %v972_v32 = vsub.f32 0.0, %v2760_v29 }
 0x1ed   : > { %v2047_v34 = vpop.eup %2046  ;;  %2066 = vpow2.f32 %v997_v26  ;;  %v2765_v35 = vpop.f32.mrf.mxu0 }
 0x1ee   : > { %2068 = vrcp.f32 %v1011_v30  ;;  %v1012_v36 = vadd.f32 1.0, %v2047_v34  ;;  %v1001_v37 = vmul.f32 1.442695, %v972_v32  ;;  %v973_v38 = vsub.f32 0.0, %v2765_v35 }
 0x1ef   : > { %v2049_v39 = vpop.eup %2048  ;;  %2070 = vpow2.f32 %v999_v31  ;;  %v2768_v40 = vpop.f32.mrf.mxu0 }
 0x1f0   : > { %2072 = vrcp.f32 %v1012_v36  ;;  %v1013_v42 = vadd.f32 1.0, %v2049_v39  ;;  %v1003_v44 = vmul.f32 1.442695, %v973_v38  ;;  %v974_v45 = vsub.f32 0.0, %v2768_v40 }
 0x1f1   : > { %v2051_v48 = vpop.eup %2050  ;;  %2074 = vpow2.f32 %v1001_v37 }
 0x1f2   : > { %2076 = vrcp.f32 %v1013_v42  ;;  %v1014_v50 = vadd.f32 1.0, %v2051_v48  ;;  %v1005_v51 = vmul.f32 1.442695, %v974_v45 }
 0x1f3   : > { %v2053_v54 = vpop.eup %2052  ;;  %2078 = vpow2.f32 %v1003_v44 }
 0x1f4   : > { %v2055_v55 = vpop.eup %2054  ;;  %2080 = vrcp.f32 %v1014_v50  ;;  %v1039_v10 = vmul.f32 %v2053_v54, %v2711_v41 }
 0x1f5   : > { %v2057_v58 = vpop.eup %2056  ;;  %2082 = vpow2.f32 %v1005_v51  ;;  %v1015_v62 = vadd.f32 1.0, %v2055_v55 }
 0x1f6   : > { %v2059_v61 = vpop.eup %2058  ;;  %v1040_v5 = vmul.f32 %v2057_v58, %v2714_v43  ;;  %v1055_v41 = vmul.f32 %v1039_v10, %v2723_v52 }
 0x1f7   : > { %v2061_v0 = vpop.eup %2060  ;;  %v1016_v1 = vadd.f32 1.0, %v2059_v61 }
 0x1f8   : > { %v2063_v4 = vpop.eup %2062  ;;  %v1041_v6 = vmul.f32 %v2061_v0, %v2717_v46  ;;  %v1056_v43 = vmul.f32 %v1040_v5, %v2731_v59  ;;  %v944_v59 = vpop.f32.mrf.mxu1 }
 0x1f9   : > { %v2065_v9 = vpop.eup %2064  ;;  %2084 = vrcp.f32 %v1016_v1  ;;  %v1017_v12 = vadd.f32 1.0, %v2063_v4 }
 0x1fa   : > { %v2067_v14 = vpop.eup %2066  ;;  %v1042_v15 = vmul.f32 %v2065_v9, %v2720_v49  ;;  %2086 = vrcp.f32 %v1015_v62  ;;  %v1057_v19 = vmul.f32 %v1041_v6, %v2739_v2  ;;  %v946_v44 = vpop.f32.mrf.mxu1 }
 0x1fb   : > { %v2069_v16 = vpop.eup %2068  ;;  %2088 = vrcp.f32 %v1017_v12  ;;  %v1018_v17 = vadd.f32 1.0, %v2067_v14 }
 0x1fc   : > { %v2071_v20 = vpop.eup %2070  ;;  %v1058_v46 = vmul.f32 %v1042_v15, %v2747_v11  ;;  %v1087_v30 = vpack.c.bf16 %v1057_v19, %v1055_v41  ;;  %v1043_v11 = vmul.f32 %v2069_v16, %v2725_v53  ;;  %v950_v54 = vpop.f32.mrf.mxu1 }
 0x1fd   : > { %v2073_v23 = vpop.eup %2072  ;;  %2090 = vrcp.f32 %v1018_v17  ;;  %v1019_v26 = vadd.f32 1.0, %v2071_v20 }
 0x1fe   : > { %v2075_v25 = vpop.eup %2074  ;;  %v1088_v27 = vpack.c.bf16 %v1058_v46, %v1056_v43  ;;  %v1044_v32 = vmul.f32 %v2073_v23, %v2728_v56  ;;  %v952_v61 = vpop.f32.mrf.mxu1  ;;  %v1071_v43 = vld [vmem:[#allocation2 + $0x30] sm:$0xff]  ;;  %v1072_v46 = vld [vmem:[#allocation2] sm:$0xff]  ;;  %v1073_v23 = vld [vmem:[#allocation2 + $0x58] sm:$0xff] }
 0x1ff   : > { %v2077_v49 = vpop.eup %2076  ;;  %v1020_v28 = vadd.f32 1.0, %v2075_v25  ;;  %v1074_v25 = vld [vmem:[#allocation2 + $0x18] sm:$0xff] }
 0x200   : > { %v2079_v31 = vpop.eup %2078  ;;  %v1045_v2 = vmul.f32 %v2077_v49, %v2733_v60  ;;  %1287 = vmatprep.mubr.bf16.mxu0 %v1088_v27  ;;  %v1060_v42 = vmul.f32 %v1044_v32, %v2763_v33  ;;  %v1059_v60 = vmul.f32 %v1043_v11, %v2755_v22  ;;  %v1075_v27 = vld [vmem:[#allocation2 + $0x50] sm:$0xff]  ;;  %v1078_v11 = vld [vmem:[#allocation2 + $0x48] sm:$0xff] }
 0x201   : > { %v2081_v34 = vpop.eup %2080  ;;  %2092 = vrcp.f32 %v1020_v28  ;;  %v1021_v36 = vadd.f32 1.0, %v2079_v31  ;;  %1288 = vmatmul.mubr.bf16.vlgmr.msra.gmra.mxu0 %v1087_v30  ;;  %v1076_v30 = vld [vmem:[#allocation2 + $0x68] sm:$0xff] }
 0x202   : > { %v2083_v52 = vpop.eup %2082  ;;  %v1046_v37 = vmul.f32 %v2081_v34, %v2736_v63  ;;  %2094 = vrcp.f32 %v1019_v26  ;;  %v1061_v39 = vmul.f32 %v1045_v2, %v934_v47  ;;  %v1077_v2 = vld [vmem:[#allocation2 + $0x8] sm:$0xff] }
 0x203   : > { %2096 = vrcp.f32 %v1021_v36  ;;  %v1022_v38 = vadd.f32 1.0, %v2083_v52 }
 0x204   : > { %v1062_v56 = vmul.f32 %v1046_v37, %v936_v57  ;;  %v1089_v50 = vpack.c.bf16 %v1061_v39, %v1059_v60  ;;  %v1081_v60 = vld [vmem:[#allocation2 + $0x10] sm:$0xff] }
 0x205   : > { %2098 = vrcp.f32 %v1022_v38  ;;  %v1079_v38 = vld [vmem:[#allocation2 + $0x40] sm:$0xff] }
 0x206   : > { %v2085_v45 = vpop.eup %2084  ;;  %v1090_v48 = vpack.c.bf16 %v1062_v56, %v1060_v42  ;;  %v1080_v42 = vld [vmem:[#allocation2 + $0x20] sm:$0xff] }
 0x207   : > { %v2087_v53 = vpop.eup %2086  ;;  %v1048_v63 = vmul.f32 %v2085_v45, %v2744_v7  ;;  %v954_v7 = vpop.f32.mrf.mxu1 }
 0x208   : > { %v2089_v51 = vpop.eup %2088  ;;  %1297 = vmatprep.mubr.bf16.mxu0 %v1090_v48  ;;  %v1047_v33 = vmul.f32 %v2087_v53, %v2741_v3  ;;  %v1082_v53 = vld [vmem:[#allocation2 + $0x38] sm:$0xff] }
 0x209   : > { %v1049_v55 = vmul.f32 %v2089_v51, %v2749_v13  ;;  %1298 = vmatmul.mubr.bf16.gmra.mxu0 %v1089_v50  ;;  %v1064_v22 = vmul.f32 %v1048_v63, %v942_v21  ;;  %v956_v15 = vpop.f32.mrf.mxu1 }
 0x20a   : > { %v2091_v47 = vpop.eup %2090  ;;  %v1063_v1 = vmul.f32 %v1047_v33, %v2773_v8 }
 0x20b   : > { %v1050_v57 = vmul.f32 %v2091_v47, %v2752_v18  ;;  %v1065_v58 = vmul.f32 %v1049_v55, %v944_v59  ;;  %v1084_v47 = vld [vmem:[#allocation2 + $0x70] sm:$0xff] }
 0x20d   : > { %v1066_v62 = vmul.f32 %v1050_v57, %v946_v44  ;;  %v1091_v9 = vpack.c.bf16 %v1065_v58, %v1063_v1  ;;  %v1085_v58 = vld [vmem:[#allocation2 + $0x78] sm:$0xff] }
 0x20e   : > { %v2093_v0 = vpop.eup %2092 }
 0x20f   : > { %v2095_v4 = vpop.eup %2094  ;;  %v1092_v5 = vpack.c.bf16 %v1066_v62, %v1064_v22  ;;  %v1052_v13 = vmul.f32 %v2093_v0, %v2760_v29  ;;  %v1086_v62 = vld [vmem:[#allocation2 + $0x28] sm:$0xff] }
 0x210   : > { %v2097_v6 = vpop.eup %2096  ;;  %v1051_v18 = vmul.f32 %v2095_v4, %v2757_v24 }
 0x211   : > { %v1053_v10 = vmul.f32 %v2097_v6, %v2765_v35  ;;  %1307 = vmatprep.mubr.bf16.mxu1 %v1092_v5  ;;  %v1068_v16 = vmul.f32 %v1052_v13, %v952_v61 }
 0x212   : > { %v2099_v3 = vpop.eup %2098  ;;  %1308 = vmatmul.mubr.bf16.vlgmr.msra.gmra.mxu1 %v1091_v9  ;;  %v1067_v17 = vmul.f32 %v1051_v18, %v950_v54  ;;  %v1083_v54 = vld [vmem:[#allocation2 + $0x60] sm:$0xff] }
 0x213   : > { %v1054_v12 = vmul.f32 %v2099_v3, %v2768_v40  ;;  %v1069_v14 = vmul.f32 %v1053_v10, %v954_v7 }
 0x215   : > { %v1070_v8 = vmul.f32 %v1054_v12, %v956_v15  ;;  %v1093_v20 = vpack.c.bf16 %v1069_v14, %v1067_v17 }
 0x217   : > { %v1094_v19 = vpack.c.bf16 %v1070_v8, %v1068_v16 }
 0x219   : > { %1317 = vmatprep.mubr.bf16.mxu1 %v1094_v19 }
 0x21a   : > { %1318 = vmatmul.mubr.bf16.gmra.mxu1 %v1093_v20 }
 0x2c1   : > { %v1289_v29 = vpop.f32.mrf.mxu0 }
 0x2c2   : > { %v1328_v35 = vadd.f32 %v1289_v29, %v1071_v43 }
 0x2c3   : > { %v1291_v21 = vpop.f32.mrf.mxu0 }
 0x2c4   : > { %1344 = vst [vmem:[#allocation2 + $0x30] sm:$0xff] %v1328_v35  ;;  %v1329_v24 = vadd.f32 %v1291_v21, %v1072_v46 }
 0x2c5   : > { %v1293_v41 = vpop.f32.mrf.mxu0 }
 0x2c6   : > { %1345 = vst [vmem:[#allocation2] sm:$0xff] %v1329_v24  ;;  %v1330_v40 = vadd.f32 %v1293_v41, %v1073_v23 }
 0x2c7   : > { %v1295_v26 = vpop.f32.mrf.mxu0 }
 0x2c8   : > { %1346 = vst [vmem:[#allocation2 + $0x58] sm:$0xff] %v1330_v40  ;;  %v1331_v49 = vadd.f32 %v1295_v26, %v1074_v25 }
 0x2c9   : > { %v1299_v28 = vpop.f32.mrf.mxu0 }
 0x2ca   : > { %1347 = vst [vmem:[#allocation2 + $0x18] sm:$0xff] %v1331_v49  ;;  %v1332_v31 = vadd.f32 %v1299_v28, %v1075_v27 }
 0x2cb   : > { %v1301_v32 = vpop.f32.mrf.mxu0 }
 0x2cc   : > { %1348 = vst [vmem:[#allocation2 + $0x50] sm:$0xff] %v1332_v31  ;;  %v1333_v59 = vadd.f32 %v1301_v32, %v1076_v30 }
 0x2cd   : > { %v1303_v34 = vpop.f32.mrf.mxu0 }
 0x2ce   : > { %1349 = vst [vmem:[#allocation2 + $0x68] sm:$0xff] %v1333_v59  ;;  %v1334_v36 = vadd.f32 %v1303_v34, %v1077_v2 }
 0x2cf   : > { %v1305_v52 = vpop.f32.mrf.mxu0 }
 0x2d0   : > { %1350 = vst [vmem:[#allocation2 + $0x8] sm:$0xff] %v1334_v36  ;;  %v1335_v37 = vadd.f32 %v1305_v52, %v1078_v11 }
 0x2d2   : > { %1351 = vst [vmem:[#allocation2 + $0x48] sm:$0xff] %v1335_v37  ;;  %v1309_v39 = vpop.f32.mrf.mxu1 }
 0x2d3   : > { %v1336_v56 = vadd.f32 %v1309_v39, %v1079_v38 }
 0x2d4   : > { %v1311_v44 = vpop.f32.mrf.mxu1 }
 0x2d5   : > { %1352 = vst [vmem:[#allocation2 + $0x40] sm:$0xff] %v1336_v56  ;;  %v1337_v45 = vadd.f32 %v1311_v44, %v1080_v42 }
 0x2d6   : > { %v1313_v48 = vpop.f32.mrf.mxu1 }
 0x2d7   : > { %1353 = vst [vmem:[#allocation2 + $0x20] sm:$0xff] %v1337_v45  ;;  %v1338_v50 = vadd.f32 %v1313_v48, %v1081_v60 }
 0x2d8   : > { %v1315_v51 = vpop.f32.mrf.mxu1 }
 0x2d9   : > { %1354 = vst [vmem:[#allocation2 + $0x10] sm:$0xff] %v1338_v50  ;;  %v1339_v63 = vadd.f32 %v1315_v51, %v1082_v53 }
 0x2da   : > { %v1319_v55 = vpop.f32.mrf.mxu1 }
 0x2db   : > { %1355 = vst [vmem:[#allocation2 + $0x38] sm:$0xff] %v1339_v63  ;;  %v1340_v33 = vadd.f32 %v1319_v55, %v1083_v54 }
 0x2dc   : > { %v1321_v57 = vpop.f32.mrf.mxu1 }
 0x2dd   : > { %1356 = vst [vmem:[#allocation2 + $0x60] sm:$0xff] %v1340_v33  ;;  %v1341_v61 = vadd.f32 %v1321_v57, %v1084_v47 }
 0x2de   : > { %v1323_v22 = vpop.f32.mrf.mxu1 }
 0x2df   : > { %1357 = vst [vmem:[#allocation2 + $0x70] sm:$0xff] %v1341_v61  ;;  %v1342_v0 = vadd.f32 %v1323_v22, %v1085_v58  ;;  %1363 = sbr.rel (%p1696_p6) target bundleno = 750 (0x2ee), region = 60 }
 0x2e0   : > { %v1325_v1 = vpop.f32.mrf.mxu1 }
 0x2e1   : > { %1358 = vst [vmem:[#allocation2 + $0x78] sm:$0xff] %v1342_v0  ;;  %v1343_v4 = vadd.f32 %v1325_v1, %v1086_v62 }
 0x2e3   : > { %1359 = vst [vmem:[#allocation2 + $0x28] sm:$0xff] %v1343_v4 }
 0x2e4   : > { %v1364_v5 = vld [vmem:[#allocation2 + $0x30] sm:$0xff]  ;;  %v1365_v6 = vld [vmem:[#allocation2] sm:$0xff]  ;;  %v1366_v9 = vld [vmem:[#allocation2 + $0x58] sm:$0xff] }
 0x2e5   : > { %v1717_v7 = vpack.c.bf16 %v1365_v6, %v1364_v5  ;;  %v1367_v13 = vld [vmem:[#allocation2 + $0x18] sm:$0xff]  ;;  %v1368_v10 = vld [vmem:[#allocation2 + $0x50] sm:$0xff]  ;;  %v1369_v3 = vld [vmem:[#allocation2 + $0x68] sm:$0xff] }
 0x2e6   : > { %v1718_v18 = vpack.c.bf16 %v1367_v13, %v1366_v9  ;;  %v1719_v12 = vpack.c.bf16 %v1369_v3, %v1368_v10  ;;  %v1370_v14 = vld [vmem:[#allocation2 + $0x8] sm:$0xff]  ;;  %v1372_v16 = vld [vmem:[#allocation2 + $0x40] sm:$0xff]  ;;  %v1374_v19 = vld [vmem:[#allocation2 + $0x10] sm:$0xff] }
 0x2e7   : > { %v1371_v15 = vld [vmem:[#allocation2 + $0x48] sm:$0xff]  ;;  %1428 = vst [vmem:[#allocation11] sm:$0xff] %v1717_v7  ;;  %v1373_v17 = vld [vmem:[#allocation2 + $0x20] sm:$0xff]  ;;  %v1375_v20 = vld [vmem:[#allocation2 + $0x38] sm:$0xff] }
 0x2e8   : > { %v1720_v8 = vpack.c.bf16 %v1371_v15, %v1370_v14  ;;  %1429 = vst [vmem:[#allocation11 + $0x8] sm:$0xff] %v1718_v18  ;;  %1430 = vst [vmem:[#allocation11 + $0x10] sm:$0xff] %v1719_v12  ;;  %v1721_v43 = vpack.c.bf16 %v1373_v17, %v1372_v16  ;;  %v1722_v29 = vpack.c.bf16 %v1375_v20, %v1374_v19  ;;  %v1376_v46 = vld [vmem:[#allocation2 + $0x60] sm:$0xff]  ;;  %v1377_v35 = vld [vmem:[#allocation2 + $0x70] sm:$0xff] }
 0x2e9   : > { %v1378_v21 = vld [vmem:[#allocation2 + $0x78] sm:$0xff]  ;;  %v1723_v23 = vpack.c.bf16 %v1377_v35, %v1376_v46 }
 0x2ea   : > { %1431 = vst [vmem:[#allocation11 + $0x18] sm:$0xff] %v1720_v8  ;;  %v1379_v24 = vld [vmem:[#allocation2 + $0x28] sm:$0xff]  ;;  %1432 = vst [vmem:[#allocation11 + $0x20] sm:$0xff] %v1721_v43 }
 0x2eb   : > { %1433 = vst [vmem:[#allocation11 + $0x28] sm:$0xff] %v1722_v29  ;;  %v1724_v41 = vpack.c.bf16 %v1379_v24, %v1378_v21  ;;  %1434 = vst [vmem:[#allocation11 + $0x30] sm:$0xff] %v1723_v23 }
 0x2ed   : > { %1435 = vst [vmem:[#allocation11 + $0x38] sm:$0xff] %v1724_v41 }
 0x2ee PF: > { %s2902_s21 = sshll.u32 %s2328_s22, 10  ;;  %s2350_s8 = smov [#allocation11]  }
 0x2ef   : > { %s1445_s1 = scalar_lea.hbm %s2855_s4, %s2902_s21  ;;  %s1446_s30 = sshll.u32 %s2350_s8, 4  ;;  %s1447_s30 = int_to_ptr.vmem [resolvable:$true] %s1446_s30 }
 0x2f0   : > { %s2212_s15 = scalar_lea.vmem %s1447_s30, 1024  ;;  %p2903_p8 = scmp.ne.s32.totalorder %s2890_s18, 0 }
 0x2f1   : > { %p2213_p7 = scmp.ne.s32.totalorder %s1447_s30, %s2212_s15  ;;  %p2219_p1 = scmp.lt.s32.totalorder %s1447_s30, %s1447_s30 }
 0x2f2   : > { %p2220_p3 = scmp.lt.s32.totalorder %s2212_s15, %s2212_s15 }
 0x2f3   : > { %p2214_p5 = pnand %p2213_p7, %p2903_p8 }
 0x2f4   : > { %p2221_p4 = por %p2220_p3, %p2219_p1 }
 0x2f5   : > { %p2215_p11 = pneg %p2214_p5 }
 0x2f7   : > { %p2222_p10 = pnand %p2221_p4, %p2215_p11 }
 0x2f9   : > { %2225 = shalt.err (!%p2222_p10)
}
 0x2fa   : > { %s2226_s24 = scalar_lea.hbm %s1445_s1, 1024  ;;  %s2230_s27 = scalar_lea.hbm %s2855_s4, 2048 }
 0x2fb   : > { %p2227_p13 = scmp.ne.s32.totalorder %s1445_s1, %s2226_s24  ;;  %p2231_p0 = scmp.lt.s32.totalorder %s1445_s1, %s2855_s4 }
 0x2fc   : > { %p2232_p2 = scmp.lt.s32.totalorder %s2230_s27, %s2226_s24 }
 0x2fd   : > { %p2228_p9 = pnand %p2227_p13, %p2903_p8 }
 0x2fe   : > { %p2233_p6 = por %p2232_p2, %p2231_p0 }
 0x2ff   : > { %p2229_p12 = pneg %p2228_p9 }
 0x301   : > { %p2234_p7 = pnand %p2233_p6, %p2229_p12 }
 0x303   : > { %2237 = shalt.err (!%p2234_p7)
}
 0x304   : > { %s2351_s7 = smov 128   ;;  %s2352_s9 = smov 8  }
 0x305   : > { %1767 = dma.vmem_to_hbm [thread:$0]  (%p2903_p8), %s1447_s30, 1024, %s1445_s1, [#allocation5], %s2351_s7, %s2351_s7, %s2352_s9  }
 0x306   : > { %2295 = dma.done.wait (%p2903_p8), [#allocation5], 1024  }
 0x307   : > { %2297 = vsyncadd (%p2903_p8), [#allocation5], 4294966272 }
 0x308 PF: > { %s22_s25 = sadd.s32 1, %s2340_s25   ;;  %s2904_s0 = sld [smem:[#allocation20_spill]] }
 0x309   : > { %p19_p5 = scmp.ge.s32.totalorder %s22_s25, 10   ;;  %s2905_s11 = sld [smem:[#allocation16_spill]] }
 0x30a   : > { %s2906_s20 = sld [smem:[#allocation21_spill]]  ;;  %s2910_s15 = smov %s2304_s16 }
 0x30b   : > { %s2907_s22 = sld [smem:[#allocation17_spill]]  ;;  %s2911_s16 = smov %s2308_s17 }
 0x30c   : > { %s2908_s5 = sld [smem:[#allocation18_spill]]  ;;  %s2913_s18 = smov %s2316_s19 }
 0x30d   : > { %s2909_s24 = sld [smem:[#allocation19_spill]]  ;;  %s2915_s21 = smov %s2332_s23 }
 0x30e   : > { %s2912_s17 = smov %s2904_s0  ;;  %21 = sbr.rel (!%p19_p5) target bundleno = 15 (0xf), region = 112 }
 0x30f   : > { %s2914_s19 = smov %s2905_s11 }
 0x312   : > { %s2916_s23 = smov %s2908_s5 }
 0x313   :  { %1462 = vsyncpa [#allocation4], 1 }
 0x314   :  { %1464 = vsyncpa [#allocation4 + $0x1], 1 }
 0x315   :  { %1465 = vsyncpa [#allocation7], 1 }
 0x316   :  { %1467 = vsyncpa [#allocation7 + $0x1], 1 }
 0x317   :  { %1468 = vsyncpa [#allocation10], 1 }
 0x318   :  { %1470 = vsyncpa [#allocation10 + $0x1], 1 }
 0x319   :  { %1471 = vsyncpa [#allocation5], 1 }
 0x31a   :  { %1473 = vsyncpa [#allocation5 + $0x1], 1 }

</bundles_post_ra>
